<compile_context>
chip_gen: v5e
topology: v5e:2x2
jax: 0.10.0
libtpu: 0.0.40
codegen_flags: <defaults>
</compile_context>

<pallas_src>
import functools

import jax
import jax.numpy as jnp
from jax import lax
from jax.experimental import pallas as pl
from jax.experimental.pallas import tpu as pltpu

HEAD_LANES = 128  # lane-dense fused-head width: [0, A) = policy logits, col A = value, rest = pad


def _actor_critic_kernel(x_ref, w1_ref, b1_ref, wh_ref, bh_ref, out_ref, *,
                         softmax_dim, n_actions):
    # hidden = relu(x @ W1 + b1); bf16 MXU operands, f32 accumulation + f32 elementwise.
    h = jnp.dot(x_ref[...].astype(jnp.bfloat16), w1_ref[...],
                preferred_element_type=jnp.float32)
    h = jnp.maximum(h + b1_ref[...], 0.0)

    # Fused heads: one MXU push producing [policy logits | value | zero pad] -> [B, 128] f32.
    heads = jnp.dot(h.astype(jnp.bfloat16), wh_ref[...],
                    preferred_element_type=jnp.float32) + bh_ref[...]

    col = lax.broadcasted_iota(jnp.int32, heads.shape, dimension=1)
    is_pi = col < n_actions

    # Softmax over the policy columns only. Pad/value columns are pushed to a huge negative
    # value so softmax_dim=1 ignores them; softmax_dim=0 is per-column and unaffected for the
    # real policy columns (pad columns produce harmless values that get sliced away).
    logits = jnp.where(is_pi, heads, jnp.float32(-1e30))
    m = jnp.max(logits, axis=softmax_dim, keepdims=True)
    e = jnp.exp(logits - m)
    denom = jnp.sum(e, axis=softmax_dim, keepdims=True)
    prob = e * pl.reciprocal(denom, approx=True)

    # Single lane-dense output slab: cols [0, A) = prob, col A = value, cols > A = pad.
    out_ref[...] = jnp.where(is_pi, prob, heads)


def prepare_kernel_params(params):
    """Convert f32 (w1,b1,wpi,bpi,wv,bv) into kernel operands.

    Weights -> bf16 (halves DMA / VMEM footprint, full-rate MXU on v6e/v7x);
    biases stay f32. Heads are fused and zero-padded to HEAD_LANES output columns.
    """
    w1, b1, wpi, bpi, wv, bv = params
    hidden = w1.shape[1]
    n_actions = wpi.shape[1]
    assert n_actions + 1 <= HEAD_LANES

    wh = jnp.zeros((hidden, HEAD_LANES), jnp.float32)
    wh = wh.at[:, :n_actions].set(wpi).at[:, n_actions:n_actions + 1].set(wv)
    bh = jnp.zeros((1, HEAD_LANES), jnp.float32)
    bh = bh.at[:, :n_actions].set(bpi).at[:, n_actions:n_actions + 1].set(bv)

    return (w1.astype(jnp.bfloat16), b1.astype(jnp.float32),
            wh.astype(jnp.bfloat16), bh.astype(jnp.float32), n_actions)


def actor_critic_forward(x, kernel_params, softmax_dim=0):
    """Equivalent of ActorCritic.forward(state, softmax_dim). x: [B, inputs] float32."""
    w1, b1, wh, bh, n_actions = kernel_params
    B = x.shape[0]

    kernel = functools.partial(_actor_critic_kernel,
                               softmax_dim=softmax_dim, n_actions=n_actions)
    out = pl.pallas_call(
        kernel,
        out_shape=jax.ShapeDtypeStruct((B, HEAD_LANES), jnp.float32),
        # Small model: every operand fits comfortably in VMEM as a single full-array block.
        in_specs=[pl.BlockSpec(memory_space=pltpu.MemorySpace.VMEM)] * 5,
        out_specs=pl.BlockSpec(memory_space=pltpu.MemorySpace.VMEM),
    )(x, w1, b1, wh, bh)

    prob = out[:, :n_actions]
    v = out[:, n_actions:n_actions + 1]
    return prob, v


def init_params(key, n_inputs, n_outputs, hidden=256):
    """Deterministic init mirroring PyTorch nn.Linear default (uniform +/- 1/sqrt(fan_in)).

    Weights stored as [in_features, out_features] so the kernel computes x @ W + b.
    """
    ks = jax.random.split(key, 6)

    def linear(kw, kb, fan_in, fan_out):
        bound = 1.0 / jnp.sqrt(jnp.float32(fan_in))
        w = jax.random.uniform(kw, (fan_in, fan_out), jnp.float32, -bound, bound)
        b = jax.random.uniform(kb, (1, fan_out), jnp.float32, -bound, bound)
        return w, b

    w1, b1 = linear(ks[0], ks[1], n_inputs, hidden)
    wpi, bpi = linear(ks[2], ks[3], hidden, n_outputs)
    wv, bv = linear(ks[4], ks[5], hidden, 1)
    return (w1, b1, wpi, bpi, wv, bv)


def _reference_forward(x, params, softmax_dim=0):
    w1, b1, wpi, bpi, wv, bv = params
    h = jnp.maximum(x @ w1 + b1, 0.0)
    logits = h @ wpi + bpi
    prob = jax.nn.softmax(logits, axis=softmax_dim)
    v = h @ wv + bv
    return prob, v


# TODO(synk): optimizer / Adam, replay memory and learn() are training-side host logic with no
# Pallas forward-pass equivalent; only forward/pi/v math is implemented here.

if __name__ == "__main__":
    key = jax.random.PRNGKey(0)
    k_param, k_x = jax.random.split(key)

    n_inputs, n_outputs, batch = 4, 2, 8
    params = init_params(k_param, n_inputs, n_outputs, hidden=256)
    kparams = prepare_kernel_params(params)
    x = jax.random.normal(k_x, (batch, n_inputs), jnp.float32)

    # Matches ActorCritic.forward default softmax_dim=0 (softmax over the batch axis).
    prob0, v0 = actor_critic_forward(x, kparams, softmax_dim=0)
    # Also exercise softmax_dim=1 (used by ActorCritic.pi during learn()).
    prob1, v1 = actor_critic_forward(x, kparams, softmax_dim=1)
    jax.block_until_ready((prob0, v0, prob1, v1))

    prob0_ref, v0_ref = _reference_forward(x, params, softmax_dim=0)
    prob1_ref, _ = _reference_forward(x, params, softmax_dim=1)

    assert prob0.shape == (batch, n_outputs) and v0.shape == (batch, 1)
    # bf16 MXU operands -> slightly looser tolerance vs. the pure-f32 reference.
    assert jnp.allclose(prob0, prob0_ref, atol=2e-2, rtol=2e-2)
    assert jnp.allclose(v0, v0_ref, atol=2e-2, rtol=2e-2)
    assert jnp.allclose(prob1, prob1_ref, atol=2e-2, rtol=2e-2)
    assert jnp.allclose(v1, v0_ref, atol=2e-2, rtol=2e-2)
    # softmax over dim=0 -> columns sum to 1; dim=1 -> rows sum to 1 (approx reciprocal).
    assert jnp.allclose(jnp.sum(prob0, axis=0), jnp.ones((n_outputs,)), atol=1e-2)
    assert jnp.allclose(jnp.sum(prob1, axis=1), jnp.ones((batch,)), atol=1e-2)

    print("KERNEL_OK")
</pallas_src>

<mosaic_0001>
module attributes {stable_mosaic.version = 11 : i64} {
  func.func @_actor_critic_kernel(%arg0: memref<8x4xf32, #tpu.memory_space<vmem>>, %arg1: memref<4x256xbf16, #tpu.memory_space<vmem>>, %arg2: memref<1x256xf32, #tpu.memory_space<vmem>>, %arg3: memref<256x128xbf16, #tpu.memory_space<vmem>>, %arg4: memref<1x128xf32, #tpu.memory_space<vmem>>, %arg5: memref<8x128xf32, #tpu.memory_space<vmem>>) attributes {dimension_semantics = [], scalar_prefetch = 0 : i64, scratch_operands = 0 : i64, tpu.core_type = #tpu.core_type<tc>} {
    %c0 = arith.constant 0 : index
    %c0_0 = arith.constant 0 : index
    %0 = vector.load %arg0[%c0, %c0_0] : memref<8x4xf32, #tpu.memory_space<vmem>>, vector<8x4xf32>
    %1 = arith.truncf %0 : vector<8x4xf32> to vector<8x4xbf16>
    %c0_1 = arith.constant 0 : index
    %c0_2 = arith.constant 0 : index
    %2 = vector.load %arg1[%c0_1, %c0_2] : memref<4x256xbf16, #tpu.memory_space<vmem>>, vector<4x256xbf16>
    %cst = arith.constant dense<0.000000e+00> : vector<8x256xf32>
    %3 = tpu.matmul %1, %2, %cst {dimension_numbers = #tpu.dot_dimension_numbers<[1], [0], [0], [1], [0, 0, 1, 1], [], []>} : vector<8x4xbf16>, vector<4x256xbf16>, vector<8x256xf32> -> vector<8x256xf32>
    %c0_3 = arith.constant 0 : index
    %c0_4 = arith.constant 0 : index
    %4 = vector.load %arg2[%c0_3, %c0_4] : memref<1x256xf32, #tpu.memory_space<vmem>>, vector<1x256xf32>
    %5 = vector.broadcast %4 : vector<1x256xf32> to vector<8x256xf32>
    %6 = arith.addf %3, %5 : vector<8x256xf32>
    %cst_5 = arith.constant 0.000000e+00 : f32
    %7 = vector.broadcast %cst_5 : f32 to vector<8x256xf32>
    %8 = arith.maximumf %6, %7 : vector<8x256xf32>
    %9 = arith.truncf %8 : vector<8x256xf32> to vector<8x256xbf16>
    %c0_6 = arith.constant 0 : index
    %c0_7 = arith.constant 0 : index
    %10 = vector.load %arg3[%c0_6, %c0_7] : memref<256x128xbf16, #tpu.memory_space<vmem>>, vector<256x128xbf16>
    %cst_8 = arith.constant dense<0.000000e+00> : vector<8x128xf32>
    %11 = tpu.matmul %9, %10, %cst_8 {dimension_numbers = #tpu.dot_dimension_numbers<[1], [0], [0], [1], [0, 0, 1, 1], [], []>} : vector<8x256xbf16>, vector<256x128xbf16>, vector<8x128xf32> -> vector<8x128xf32>
    %c0_9 = arith.constant 0 : index
    %c0_10 = arith.constant 0 : index
    %12 = vector.load %arg4[%c0_9, %c0_10] : memref<1x128xf32, #tpu.memory_space<vmem>>, vector<1x128xf32>
    %13 = vector.broadcast %12 : vector<1x128xf32> to vector<8x128xf32>
    %14 = arith.addf %11, %13 : vector<8x128xf32>
    %15 = tpu.iota {dimensions = array<i32: 1>} : vector<8x128xi32>
    %c2_i32 = arith.constant 2 : i32
    %16 = vector.broadcast %c2_i32 : i32 to vector<8x128xi32>
    %17 = arith.cmpi slt, %15, %16 : vector<8x128xi32>
    %cst_11 = arith.constant -1.000000e+30 : f32
    %18 = vector.broadcast %cst_11 : f32 to vector<8x128xf32>
    %19 = arith.select %17, %14, %18 : vector<8x128xi1>, vector<8x128xf32>
    %cst_12 = arith.constant dense<0xFF800000> : vector<128xf32>
    %20 = vector.multi_reduction <maximumf>, %19, %cst_12 [0] : vector<8x128xf32> to vector<128xf32>
    %21 = vector.shape_cast %20 : vector<128xf32> to vector<1x128xf32>
    %22 = vector.broadcast %21 : vector<1x128xf32> to vector<8x128xf32>
    %23 = arith.subf %19, %22 : vector<8x128xf32>
    %24 = math.exp %23 : vector<8x128xf32>
    %cst_13 = arith.constant dense<0.000000e+00> : vector<128xf32>
    %25 = vector.multi_reduction <add>, %24, %cst_13 [0] : vector<8x128xf32> to vector<128xf32>
    %26 = vector.shape_cast %25 : vector<128xf32> to vector<1x128xf32>
    %27 = tpu.reciprocal %26 {approx = true} : vector<1x128xf32> -> vector<1x128xf32>
    %28 = vector.broadcast %27 : vector<1x128xf32> to vector<8x128xf32>
    %29 = arith.mulf %24, %28 : vector<8x128xf32>
    %30 = arith.select %17, %29, %14 : vector<8x128xi1>, vector<8x128xf32>
    %c0_14 = arith.constant 0 : index
    %c0_15 = arith.constant 0 : index
    %31 = vector.load %arg5[%c0_14, %c0_15] : memref<8x128xf32, #tpu.memory_space<vmem>>, vector<8x128xf32>
    tpu.vector_store %arg5[%c0_14, %c0_15], %30 {strides = array<i32>} : memref<8x128xf32, #tpu.memory_space<vmem>>, vector<8x128xf32>,
    return
  }
}

</mosaic_0001>

<bundles_post_ra>
// kernel: tpu_custom_call.1
= control target key start
LH: loop header
LB: loop body
LE: loop exit
PB: predicated region body
PF: predicated region fallthrough
CT: control target
= control target key end

     0   :  { %10 = vsyncpa [#allocation3], 0  ;;  %s485_s0 = inlined_call_operand.vmem [shape: f32[8,4], index: 0, kind: input, shape index: {}]   ;;  %s486_s1 = inlined_call_operand.vmem [shape: bf16[4,256], index: 1, kind: input, shape index: {}]   ;;  %s487_s2 = inlined_call_operand.vmem [shape: f32[1,256], index: 2, kind: input, shape index: {}]   ;;  %s488_s3 = inlined_call_operand.hbm [shape: bf16[256,128], index: 3, kind: input, shape index: {}]   ;;  %s489_s4 = inlined_call_operand.vmem [shape: f32[1,128], index: 4, kind: input, shape index: {}]   ;;  %s490_s5 = inlined_call_operand.hbm [shape: f32[8,128], index: 5, kind: output, shape index: {}]  }
   0x1   :  { %11 = vsyncpa [#allocation4], 0  ;;  %s22_s20 = sshll.u32 %s488_s3, 4  ;;  %s431_s21 = smov [#allocation2]   ;;  %s23_s20 = int_to_ptr.hbm [resolvable:$true] %s22_s20 }
   0x2   :  { %s24_s22 = sshll.u32 %s431_s21, 4  ;;  %s432_s23 = smov 64   ;;  %s25_s22 = int_to_ptr.vmem [resolvable:$true] %s24_s22 }
   0x3   :  { %s433_s24 = smov 4  }
   0x4   :  { %30 = dma.hbm_to_vmem [thread:$0]  %s23_s20, 2048, %s25_s22, [#allocation3], %s432_s23, %s432_s23, %s433_s24  }
   0x5   :  { %427 = dma.done.wait [#allocation3], 2048  }
   0x6   :  { %428 = vsyncadd [#allocation3], 4294965248  ;;  %v40_v0 = vld [vmem:[%s486_s1] sm:$0xf]  ;;  %v360_v3 = vld [vmem:[#allocation2 + $0x30] sm:$0xff]  ;;  %vm55_vm0 = vcmask 1041408   ;;  %v248_v36 = vlaneseq }
   0x7   :  { %v361_v1 = vld [vmem:[#allocation2 + $0x38] sm:$0xff]  ;;  %48 = vst [vmem:[#allocation1] ss:$4 sm:$0xff] %v40_v0  ;;  %v368_v4 = vld [vmem:[#allocation2 + $0x70] sm:$0xff]  ;;  %v359_v6 = vld [vmem:[#allocation2 + $0x28] sm:$0xff]  ;;  %vm51_vm1 = vcmask 31744  }
   0x8   :  { %v369_v2 = vld [vmem:[#allocation2 + $0x78] sm:$0xff]  ;;  %222 = vmatpush.bf16.msra.mxu2 %v361_v1  ;;  %v367_v7 = vld [vmem:[#allocation2 + $0x68] sm:$0xff]  ;;  %v358_v13 = vld [vmem:[#allocation2 + $0x20] sm:$0xff]  ;;  %v249_v38 = vand.u32 127, %v248_v36  ;;  %s278_s7 = sshll.u32 %s490_s5, 4  ;;  %s279_s7 = int_to_ptr.hbm [resolvable:$true] %s278_s7 }
   0x9   :  { %235 = vmatpush.bf16.msra.mxu3 %v369_v2  ;;  %v38_v5 = vld [vmem:[%s485_s0] sm:$0xff]  ;;  %v366_v14 = vld [vmem:[#allocation2 + $0x60] sm:$0xff]  ;;  %v356_v17 = vld [vmem:[#allocation2 + $0x10] sm:$0xff] }
   0xa   :  { %v39_v12 = vpack.c.bf16 %v38_v5, %v38_v5  ;;  %v357_v15 = vld [vmem:[#allocation2 + $0x18] sm:$0xff]  ;;  %v364_v18 = vld [vmem:[#allocation2 + $0x50] sm:$0xff]  ;;  %v355_v19 = vld [vmem:[#allocation2 + $0x8] sm:$0xff]  ;;  %vm250_vm2 = vcmp.lt.s32.totalorder %v249_v38, 2 }
   0xb   :  { %v365_v16 = vld [vmem:[#allocation2 + $0x58] sm:$0xff]  ;;  %v363_v20 = vld [vmem:[#allocation2 + $0x48] sm:$0xff]  ;;  %v354_v21 = vld [vmem:[#allocation2] sm:$0xff] }
   0xc   :  { %223 = vmatpush.bf16.msra.mxu2 %v360_v3  ;;  %v362_v22 = vld [vmem:[#allocation2 + $0x40] sm:$0xff]  ;;  %v41_v23 = vld [vmem:[%s487_s2] sm:$0x3]  ;;  %s434_s2 = smov [#allocation5]  }
   0xd   :  { %236 = vmatpush.bf16.msra.mxu3 %v368_v4  ;;  %v43_v24 = vperm.slane %v41_v23, 0  ;;  %v44_v25 = vperm.slane %v41_v23, 1  ;;  %v374_v37 = vld [vmem:[%s489_s4] ss:$0 sm:$0xff]  ;;  %s276_s4 = sshll.u32 %s434_s2, 4  ;;  %s277_s4 = int_to_ptr.vmem [resolvable:$true] %s276_s4 }
   0xe   :  { %v49_v8 = vld.sshfl [vmem:[#allocation1] sm:$0xff pattern:$0x73625140]  ;;  %v50_v9 = vld.sshfl [vmem:[#allocation1 + $0x8] sm:$0xff pattern:$0x73625140] }
   0xf   :  { %v56_v10 = vsel %vm55_vm0, %v49_v8, 0  ;;  %v58_v11 = vsel %vm55_vm0, %v50_v9, 0 }
  0x10   :  { %67 = vmatpush.bf16.msra.mxu0 %v56_v10  ;;  %80 = vmatpush.bf16.msra.mxu1 %v58_v11 }
  0x11   :  { %224 = vmatpush.bf16.msra.mxu2 %v359_v6  ;;  %237 = vmatpush.bf16.msra.mxu3 %v367_v7 }
  0x13   :  { %288 = vmatmul.msk.bf16.vlgmr.msra.gmra.mxu0 %vm51_vm1, %v39_v12  ;;  %289 = vmatmul.msk.bf16.vlgmr.msra.gmra.mxu1 %vm51_vm1, %v39_v12 }
  0x15   :  { %225 = vmatpush.bf16.msra.mxu2 %v358_v13  ;;  %238 = vmatpush.bf16.msra.mxu3 %v366_v14 }
  0x19   :  { %226 = vmatpush.bf16.msra.mxu2 %v357_v15  ;;  %239 = vmatpush.bf16.msra.mxu3 %v365_v16 }
  0x1d   :  { %227 = vmatpush.bf16.msra.mxu2 %v356_v17  ;;  %240 = vmatpush.bf16.msra.mxu3 %v364_v18 }
  0x21   :  { %228 = vmatpush.bf16.msra.mxu2 %v355_v19  ;;  %241 = vmatpush.bf16.msra.mxu3 %v363_v20 }
  0x25   :  { %229 = vmatpush.bf16.msra.mxu2 %v354_v21  ;;  %242 = vmatpush.bf16.msra.mxu3 %v362_v22 }
  0x90   :  { %v69_v26 = vpop.f32.mrf.mxu0  ;;  %v82_v27 = vpop.f32.mrf.mxu1 }
  0x91   :  { %v70_v28 = vadd.f32 %v69_v26, %v43_v24  ;;  %v83_v29 = vadd.f32 %v82_v27, %v44_v25 }
  0x93   :  { %v86_v30 = vmax.f32 %v70_v28, 0.0  ;;  %v87_v31 = vmax.f32 %v83_v29, 0.0 }
  0x95   :  { %v88_v32 = vpack.c.bf16 %v86_v30, %v86_v30  ;;  %v89_v33 = vpack.c.bf16 %v87_v31, %v87_v31 }
  0x97   :  { %230 = vmatmul.bf16.vlgmr.msra.gmra.mxu2 %v88_v32  ;;  %243 = vmatmul.bf16.vlgmr.msra.gmra.mxu3 %v89_v33 }
  0x98   :  { %v71_v34 = vpop.f32.mrf.mxu0  ;;  %v84_v35 = vpop.f32.mrf.mxu1 }
 0x11a   :  { %v231_v39 = vpop.f32.mrf.mxu2  ;;  %v244_v40 = vpop.f32.mrf.mxu3 }
 0x11b   :  { %v232_v41 = vadd.f32 %v374_v37, %v231_v39 }
 0x11d   :  { %v245_v42 = vadd.f32 %v244_v40, %v232_v41 }
 0x11f   :  { %v251_v43 = vsel %vm250_vm2, %v245_v42, -1e+30 }
 0x120   :  { %v252_v44 = vrot.slane %v251_v43, 4 }
 0x122   :  { %v253_v45 = vmax.f32 %v251_v43, %v252_v44  ;;  %v233_v46 = vpop.f32.mrf.mxu2  ;;  %v246_v47 = vpop.f32.mrf.mxu3 }
 0x124   :  { %v254_v48 = vrot.slane %v253_v45, 2 }
 0x126   :  { %v255_v49 = vmax.f32 %v253_v45, %v254_v48 }
 0x128   :  { %v256_v50 = vrot.slane %v255_v49, 1 }
 0x12a   :  { %v257_v51 = vmax.f32 %v255_v49, %v256_v50 }
 0x12c   :  { %v258_v52 = vsub.f32 %v251_v43, %v257_v51 }
 0x12e   :  { %v259_v53 = vmul.f32 1.442695, %v258_v52 }
 0x130   :  { %375 = vpow2.f32 %v259_v53 }
 0x136   :  { %v376_v54 = vpop.eup %375 }
 0x137   :  { %v261_v55 = vrot.slane %v376_v54, 4 }
 0x139   :  { %v262_v56 = vadd.f32 %v376_v54, %v261_v55 }
 0x13b   :  { %v263_v57 = vrot.slane %v262_v56, 2 }
 0x13d   :  { %v264_v58 = vadd.f32 %v263_v57, %v262_v56 }
 0x13f   :  { %v265_v59 = vrot.slane %v264_v58, 1 }
 0x141   :  { %v266_v60 = vadd.f32 %v265_v59, %v264_v58 }
 0x143   :  { %377 = vrcp.f32 %v266_v60 }
 0x149   :  { %v378_v61 = vpop.eup %377 }
 0x14a   :  { %v268_v62 = vmul.f32 %v378_v61, %v376_v54 }
 0x14c   :  { %v269_v63 = vsel %vm250_vm2, %v268_v62, %v245_v42 }
 0x14d   :  { %270 = vst [vmem:[#allocation5] sm:$0xff] %v269_v63 }
 0x14e   :  { %281 = dma.vmem_to_hbm [thread:$0]  %s277_s4, 128, %s279_s7, [#allocation4]  }
 0x14f   :  { %429 = dma.done.wait [#allocation4], 128  }
 0x150   :  { %430 = vsyncadd [#allocation4], 4294967168 }
 0x151   :  { %286 = vsyncpa [#allocation3], 1 }
 0x152   :  { %287 = vsyncpa [#allocation4], 1 }

</bundles_post_ra>
